<compile_context>
chip_gen: v7x
topology: tpu7x:2x2x1
jax: 0.10.0
libtpu: 0.0.40
codegen_flags: <defaults>
</compile_context>

<pallas_src>
import math
import functools

import jax
import jax.numpy as jnp
from jax import lax
from jax.experimental import pallas as pl
from jax.experimental.pallas import tpu as pltpu

# ---------------- configuration (small, consistent with the module) ----------------
B = 2            # batch
IN_DIM = 4       # input_dim
OUT_DIM = 8      # output_dim
GROUPS = 2
DEGREE = 3
K = 3            # kernel_size
H = W = 16
EPS = 1e-5       # InstanceNorm2d default eps

CG = IN_DIM // GROUPS                 # input channels per group
OG = OUT_DIM // GROUPS                # output channels per group
CP = CG * (DEGREE + 1)                # poly input channels per group (full basis)
HO, WO = H - K + 1, W - K + 1         # VALID conv output spatial size


# ---------------- elementwise helpers --------------------------------------------
def _gelu_erf_approx(x):
    # Abramowitz & Stegun 7.1.26 erf approximation, |err| <= 1.5e-7.
    # TODO(synk): PyTorch nn.GELU uses exact erf; Pallas-TPU erf lowering support is
    # uncertain, so we use a 1.5e-7-accurate rational approximation (exp/poly only).
    p = 0.3275911
    a1, a2, a3, a4, a5 = 0.254829592, -0.284496736, 1.421413741, -1.453152027, 1.061405429
    z = x * (1.0 / math.sqrt(2.0))
    sign = jnp.where(z >= 0.0, 1.0, -1.0)
    az = jnp.abs(z)
    t = 1.0 / (1.0 + p * az)
    poly = t * (a1 + t * (a2 + t * (a3 + t * (a4 + t * a5))))
    erf = sign * (1.0 - poly * jnp.exp(-az * az))
    return 0.5 * x * (1.0 + erf)


# ---------------- Pallas kernel: one invocation does everything --------------------
def fib_kan_kernel(p_ref, w_ref, a_ref, o_ref, rhs_ref, *, ndeg, p_valid, eps):
    """p_ref:  (NB*KKC, PPAD)  im2col patches of raw x, rows = (b, g, tap, c)
       w_ref:  (NB*Og, S*NB*KKC) block-diagonal fused weights, rows = (b, g, og)
       a_ref:  (NB*Og, 1)      per-row PReLU slope
       o_ref:  (NB*Og, PPAD)   normalized + PReLU output (pad cols zero)
       rhs_ref: VMEM scratch (S*NB*KKC, PPAD) for the stacked RHS slabs."""
    praw = p_ref[...]                           # (72, 256) f32
    nrows = praw.shape[0]

    # ---- slab 0: base branch GELU(x); slabs 1..ndeg: Fibonacci F_2..F_{degree} -----
    rhs_ref[0:nrows, :] = _gelu_erf_approx(praw)
    t = jnp.tanh(praw)
    f_cur = t                                   # F_2 = x_n * F_1 + F_0 = tanh(x)
    rhs_ref[nrows:2 * nrows, :] = f_cur
    if ndeg >= 2:
        f_prev, f_cur = f_cur, t * t + 1.0      # F_3 = x_n * F_2 + F_1 (F_1 == 1)
        rhs_ref[2 * nrows:3 * nrows, :] = f_cur
    for s in range(3, ndeg + 1):                # slab s holds F_{s+1}
        f_prev, f_cur = f_cur, t * f_cur + f_prev
        rhs_ref[s * nrows:(s + 1) * nrows, :] = f_cur

    # ---- ONE fused MXU matmul: base conv + all Fibonacci convs, all groups/batches -
    acc = jnp.dot(w_ref[...], rhs_ref[...], preferred_element_type=jnp.float32)

    # ---- InstanceNorm2d (affine=False, biased var) over the 196 valid columns ------
    cols = lax.broadcasted_iota(jnp.int32, acc.shape, 1)
    valid = cols < p_valid                      # pad cols carry F-basis garbage
    inv_p = 1.0 / float(p_valid)
    mean = jnp.sum(jnp.where(valid, acc, 0.0), axis=1, keepdims=True) * inv_p
    cent = jnp.where(valid, acc - mean, 0.0)
    var = jnp.sum(cent * cent, axis=1, keepdims=True) * inv_p
    y = cent * lax.rsqrt(var + eps)

    # ---- per-group PReLU (slope pre-expanded per output row) -----------------------
    alpha = a_ref[...]                          # (rows, 1), broadcasts over lanes
    y = jnp.where(y >= 0.0, y, alpha * y)
    o_ref[...] = y.astype(o_ref.dtype)


# ---------------- one-time parameter preparation (outside the per-input jit) -------
def prepare_params(base_w, poly_w, prelu_a, *, groups, degree, ksize, batch):
    """Builds the block-diagonal fused LHS and per-row PReLU slopes.

    LHS rows are (b, g, og); columns are (slab s, b', g', tap*Cg + c), nonzero only
    on the (b, g) == (b', g') diagonal blocks.  Slab 0 = base conv, slab d>=1 = the
    conv weights of Fibonacci term F_{d+1} (F_0/F_1 dropped, see header)."""
    g, og, cg, _, _ = base_w.shape
    kkc = ksize * ksize * cg
    ndeg = degree - 1
    assert ndeg >= 1, "degree==1 reduces to the base path (poly removed by the norm)"
    dt = base_w.dtype

    # base (G, Og, Cg, K, K) -> (G, Og, K*K*Cg), column = (ki*K + kj)*Cg + c
    bw_flat = jnp.transpose(base_w, (0, 1, 3, 4, 2)).reshape(groups, og, kkc)
    # poly (G, Og, Cg*(deg+1), K, K): channel index = c*(deg+1)+d; keep d>=2 only,
    # reorder to (G, ndeg, Og, K*K*Cg) with the same (tap, c) column order.
    pw6 = poly_w.reshape(groups, og, cg, degree + 1, ksize, ksize)[:, :, :, 2:, :, :]
    pw_flat = jnp.transpose(pw6, (0, 3, 1, 4, 5, 2)).reshape(groups, ndeg, og, kkc)

    # (G, S, Og, KKC): slab 0 = base, slab d = Fibonacci term F_{d+1}
    wsg = jnp.concatenate([bw_flat[:, None], pw_flat], axis=1)

    # block-diagonal embed over (batch, group)
    eye_b = jnp.eye(batch, dtype=dt)
    eye_g = jnp.eye(groups, dtype=dt)
    lhs = jnp.einsum("gsok,bc,gh->bgoschk", wsg, eye_b, eye_g)
    lhs = lhs.reshape(batch * groups * og, (ndeg + 1) * batch * groups * kkc)

    alpha_rows = jnp.broadcast_to(prelu_a[None, :, None], (batch, groups, og))
    alpha_rows = alpha_rows.reshape(batch * groups * og, 1).astype(dt)
    return lhs, alpha_rows


# ---------------- per-input forward (jitted) ---------------------------------------
def fibonacci_kan_conv2d(x, lhs, alpha_rows, *, groups, degree, ksize, eps=EPS):
    bsz, c_in, h, w = x.shape
    cg = c_in // groups
    ho, wo = h - ksize + 1, w - ksize + 1
    p = ho * wo
    ppad = pl.cdiv(p, 128) * 128          # lane-dense width (196 -> 256)
    kkc = ksize * ksize * cg
    nb = bsz * groups
    rows = lhs.shape[0]                   # B * G * Og
    og = rows // nb
    ndeg = degree - 1

    # ---- im2col of the RAW NCHW input in XLA (no transpose, pointwise ops commute
    # with the gather so the kernel applies GELU/tanh directly to the patch slab) ----
    xg = x.reshape(bsz, groups, cg, h, w)
    taps = [xg[:, :, :, ki:ki + ho, kj:kj + wo].reshape(bsz, groups, 1, cg, p)
            for ki in range(ksize) for kj in range(ksize)]
    praw = jnp.concatenate(taps, axis=2).reshape(nb * kkc, p)   # rows = (b, g, tap, c)
    praw = jnp.pad(praw, ((0, 0), (0, ppad - p)))               # lane-dense (72, 256)

    kernel = functools.partial(fib_kan_kernel, ndeg=ndeg, p_valid=p, eps=eps)
    out = pl.pallas_call(
        kernel,
        out_shape=jax.ShapeDtypeStruct((rows, ppad), x.dtype),
        in_specs=[
            pl.BlockSpec(memory_space=pltpu.MemorySpace.VMEM),   # patches  (72, 256)
            pl.BlockSpec(memory_space=pltpu.MemorySpace.VMEM),   # fused LHS (16, 216)
            pl.BlockSpec(memory_space=pltpu.MemorySpace.VMEM),   # PReLU rows (16, 1)
        ],
        out_specs=pl.BlockSpec(memory_space=pltpu.MemorySpace.VMEM),
        scratch_shapes=[pltpu.VMEM(((ndeg + 1) * nb * kkc, ppad), jnp.float32)],
    )(praw, lhs, alpha_rows)

    # rows are (b, g, og): matches torch.cat of per-group outputs on channels.
    return out[:, :p].reshape(bsz, groups * og, ho, wo)


# ---------------- pure-JAX reference, faithful to the PyTorch module ----------------
def reference(x, base_w, poly_w, prelu_a):
    dn = ("NCHW", "OIHW", "NCHW")
    inv_sqrt2 = 1.0 / math.sqrt(2.0)
    outs = []
    for g in range(GROUPS):
        xg = x[:, g * CG:(g + 1) * CG]
        base_in = 0.5 * xg * (1.0 + jax.scipy.special.erf(xg * inv_sqrt2))  # exact GELU
        # full Fibonacci basis F_0..F_degree, channel order c*(deg+1)+d (as in PyTorch)
        t = jnp.tanh(xg)
        fibs = [jnp.zeros_like(t), jnp.ones_like(t)]
        for _ in range(2, DEGREE + 1):
            fibs.append(t * fibs[-1] + fibs[-2])
        fibs = fibs[:DEGREE + 1]
        poly_in = jnp.stack(fibs, axis=2).reshape(B, CG * (DEGREE + 1), H, W)
        bo = lax.conv_general_dilated(base_in, base_w[g], (1, 1), "VALID",
                                      dimension_numbers=dn)
        po = lax.conv_general_dilated(poly_in, poly_w[g], (1, 1), "VALID",
                                      dimension_numbers=dn)
        comb = bo + po
        mean = jnp.mean(comb, axis=(2, 3), keepdims=True)
        var = jnp.mean(jnp.square(comb - mean), axis=(2, 3), keepdims=True)
        y = (comb - mean) * lax.rsqrt(var + EPS)
        a = prelu_a[g]
        y = jnp.where(y >= 0.0, y, a * y)
        outs.append(y)
    return jnp.concatenate(outs, axis=1)


if __name__ == "__main__":
    key = jax.random.PRNGKey(0)
    k_x, k_bw, k_pw = jax.random.split(key, 3)

    # kaiming_uniform_(nonlinearity='linear'): bound = sqrt(3 / fan_in).
    bound_base = math.sqrt(3.0 / (CG * K * K))
    base_w = jax.random.uniform(k_bw, (GROUPS, OG, CG, K, K), jnp.float32,
                                -bound_base, bound_base)
    bound_poly = math.sqrt(3.0 / (CP * K * K))
    poly_w = jax.random.uniform(k_pw, (GROUPS, OG, CP, K, K), jnp.float32,
                                -bound_poly, bound_poly)
    prelu_a = jnp.full((GROUPS,), 0.25, jnp.float32)        # nn.PReLU() default

    x = jax.random.normal(k_x, (B, IN_DIM, H, W), jnp.float32)

    # parameters are prepared once (not per input)
    lhs, alpha_rows = prepare_params(base_w, poly_w, prelu_a,
                                     groups=GROUPS, degree=DEGREE, ksize=K, batch=B)

    fwd = jax.jit(functools.partial(fibonacci_kan_conv2d,
                                    groups=GROUPS, degree=DEGREE, ksize=K))
    out = jax.block_until_ready(fwd(x, lhs, alpha_rows))

    ref = jax.block_until_ready(reference(x, base_w, poly_w, prelu_a))
    assert out.shape == (B, OUT_DIM, HO, WO), out.shape
    err = float(jnp.max(jnp.abs(out - ref)))
    assert err < 5e-4, err
    print("KERNEL_OK")
</pallas_src>

<mosaic_0001>
module attributes {stable_mosaic.version = 11 : i64} {
  func.func @fib_kan_kernel(%arg0: memref<72x256xf32, #tpu.memory_space<vmem>>, %arg1: memref<16x216xf32, #tpu.memory_space<vmem>>, %arg2: memref<16x1xf32, #tpu.memory_space<vmem>>, %arg3: memref<16x256xf32, #tpu.memory_space<vmem>>, %arg4: memref<216x256xf32, #tpu.memory_space<vmem>>) attributes {dimension_semantics = [], scalar_prefetch = 0 : i64, scratch_operands = 1 : i64, tpu.core_type = #tpu.core_type<tc>} {
    %c0 = arith.constant 0 : index
    %c0_0 = arith.constant 0 : index
    %0 = vector.load %arg0[%c0, %c0_0] : memref<72x256xf32, #tpu.memory_space<vmem>>, vector<72x256xf32>
    %cst = arith.constant 0.707106769 : f32
    %1 = vector.broadcast %cst : f32 to vector<72x256xf32>
    %2 = arith.mulf %0, %1 : vector<72x256xf32>
    %cst_1 = arith.constant 0.000000e+00 : f32
    %3 = vector.broadcast %cst_1 : f32 to vector<72x256xf32>
    %4 = arith.cmpf oge, %2, %3 : vector<72x256xf32>
    %cst_2 = arith.constant 1.000000e+00 : f32
    %cst_3 = arith.constant -1.000000e+00 : f32
    %5 = vector.broadcast %cst_2 : f32 to vector<72x256xf32>
    %6 = vector.broadcast %cst_3 : f32 to vector<72x256xf32>
    %7 = arith.select %4, %5, %6 : vector<72x256xi1>, vector<72x256xf32>
    %8 = math.absf %2 : vector<72x256xf32>
    %cst_4 = arith.constant 0.327591091 : f32
    %9 = vector.broadcast %cst_4 : f32 to vector<72x256xf32>
    %10 = arith.mulf %9, %8 : vector<72x256xf32>
    %cst_5 = arith.constant 1.000000e+00 : f32
    %11 = vector.broadcast %cst_5 : f32 to vector<72x256xf32>
    %12 = arith.addf %11, %10 : vector<72x256xf32>
    %cst_6 = arith.constant 1.000000e+00 : f32
    %13 = vector.broadcast %cst_6 : f32 to vector<72x256xf32>
    %14 = arith.divf %13, %12 : vector<72x256xf32>
    %cst_7 = arith.constant 1.06140542 : f32
    %15 = vector.broadcast %cst_7 : f32 to vector<72x256xf32>
    %16 = arith.mulf %14, %15 : vector<72x256xf32>
    %cst_8 = arith.constant -1.45315206 : f32
    %17 = vector.broadcast %cst_8 : f32 to vector<72x256xf32>
    %18 = arith.addf %17, %16 : vector<72x256xf32>
    %19 = arith.mulf %14, %18 : vector<72x256xf32>
    %cst_9 = arith.constant 1.42141378 : f32
    %20 = vector.broadcast %cst_9 : f32 to vector<72x256xf32>
    %21 = arith.addf %20, %19 : vector<72x256xf32>
    %22 = arith.mulf %14, %21 : vector<72x256xf32>
    %cst_10 = arith.constant -0.284496725 : f32
    %23 = vector.broadcast %cst_10 : f32 to vector<72x256xf32>
    %24 = arith.addf %23, %22 : vector<72x256xf32>
    %25 = arith.mulf %14, %24 : vector<72x256xf32>
    %cst_11 = arith.constant 0.254829586 : f32
    %26 = vector.broadcast %cst_11 : f32 to vector<72x256xf32>
    %27 = arith.addf %26, %25 : vector<72x256xf32>
    %28 = arith.mulf %14, %27 : vector<72x256xf32>
    %cst_12 = arith.constant 0.000000e+00 : f32
    %29 = vector.broadcast %cst_12 : f32 to vector<72x256xf32>
    %30 = arith.subf %29, %8 : vector<72x256xf32>
    %31 = arith.mulf %30, %8 : vector<72x256xf32>
    %32 = math.exp %31 : vector<72x256xf32>
    %33 = arith.mulf %28, %32 : vector<72x256xf32>
    %cst_13 = arith.constant 1.000000e+00 : f32
    %34 = vector.broadcast %cst_13 : f32 to vector<72x256xf32>
    %35 = arith.subf %34, %33 : vector<72x256xf32>
    %36 = arith.mulf %7, %35 : vector<72x256xf32>
    %cst_14 = arith.constant 5.000000e-01 : f32
    %37 = vector.broadcast %cst_14 : f32 to vector<72x256xf32>
    %38 = arith.mulf %37, %0 : vector<72x256xf32>
    %cst_15 = arith.constant 1.000000e+00 : f32
    %39 = vector.broadcast %cst_15 : f32 to vector<72x256xf32>
    %40 = arith.addf %39, %36 : vector<72x256xf32>
    %41 = arith.mulf %38, %40 : vector<72x256xf32>
    %c0_16 = arith.constant 0 : index
    %c0_17 = arith.constant 0 : index
    %42 = vector.load %arg4[%c0_16, %c0_17] : memref<216x256xf32, #tpu.memory_space<vmem>>, vector<72x256xf32>
    tpu.vector_store %arg4[%c0_16, %c0_17], %41 {strides = array<i32>} : memref<216x256xf32, #tpu.memory_space<vmem>>, vector<72x256xf32>,
    %43 = math.tanh %0 : vector<72x256xf32>
    %c72 = arith.constant 72 : index
    %c0_18 = arith.constant 0 : index
    %44 = vector.load %arg4[%c72, %c0_18] : memref<216x256xf32, #tpu.memory_space<vmem>>, vector<72x256xf32>
    tpu.vector_store %arg4[%c72, %c0_18], %43 {strides = array<i32>} : memref<216x256xf32, #tpu.memory_space<vmem>>, vector<72x256xf32>,
    %45 = arith.mulf %43, %43 : vector<72x256xf32>
    %cst_19 = arith.constant 1.000000e+00 : f32
    %46 = vector.broadcast %cst_19 : f32 to vector<72x256xf32>
    %47 = arith.addf %45, %46 : vector<72x256xf32>
    %c144 = arith.constant 144 : index
    %c0_20 = arith.constant 0 : index
    %48 = vector.load %arg4[%c144, %c0_20] : memref<216x256xf32, #tpu.memory_space<vmem>>, vector<72x256xf32>
    tpu.vector_store %arg4[%c144, %c0_20], %47 {strides = array<i32>} : memref<216x256xf32, #tpu.memory_space<vmem>>, vector<72x256xf32>,
    %c0_21 = arith.constant 0 : index
    %c0_22 = arith.constant 0 : index
    %49 = vector.load %arg1[%c0_21, %c0_22] : memref<16x216xf32, #tpu.memory_space<vmem>>, vector<16x216xf32>
    %c0_23 = arith.constant 0 : index
    %c0_24 = arith.constant 0 : index
    %50 = vector.load %arg4[%c0_23, %c0_24] : memref<216x256xf32, #tpu.memory_space<vmem>>, vector<216x256xf32>
    %cst_25 = arith.constant dense<0.000000e+00> : vector<16x256xf32>
    %51 = tpu.matmul %49, %50, %cst_25 {dimension_numbers = #tpu.dot_dimension_numbers<[1], [0], [0], [1], [0, 0, 1, 1], [], []>} : vector<16x216xf32>, vector<216x256xf32>, vector<16x256xf32> -> vector<16x256xf32>
    %52 = tpu.iota {dimensions = array<i32: 1>} : vector<16x256xi32>
    %c196_i32 = arith.constant 196 : i32
    %53 = vector.broadcast %c196_i32 : i32 to vector<16x256xi32>
    %54 = arith.cmpi slt, %52, %53 : vector<16x256xi32>
    %cst_26 = arith.constant 0.000000e+00 : f32
    %55 = vector.broadcast %cst_26 : f32 to vector<16x256xf32>
    %56 = arith.select %54, %51, %55 : vector<16x256xi1>, vector<16x256xf32>
    %cst_27 = arith.constant dense<0.000000e+00> : vector<16xf32>
    %57 = vector.multi_reduction <add>, %56, %cst_27 [1] : vector<16x256xf32> to vector<16xf32>
    %58 = vector.shape_cast %57 : vector<16xf32> to vector<16x1xf32>
    %cst_28 = arith.constant 0.00510204071 : f32
    %59 = vector.broadcast %cst_28 : f32 to vector<16x1xf32>
    %60 = arith.mulf %58, %59 : vector<16x1xf32>
    %61 = vector.broadcast %60 : vector<16x1xf32> to vector<16x256xf32>
    %62 = arith.subf %51, %61 : vector<16x256xf32>
    %cst_29 = arith.constant 0.000000e+00 : f32
    %63 = vector.broadcast %cst_29 : f32 to vector<16x256xf32>
    %64 = arith.select %54, %62, %63 : vector<16x256xi1>, vector<16x256xf32>
    %65 = arith.mulf %64, %64 : vector<16x256xf32>
    %cst_30 = arith.constant dense<0.000000e+00> : vector<16xf32>
    %66 = vector.multi_reduction <add>, %65, %cst_30 [1] : vector<16x256xf32> to vector<16xf32>
    %67 = vector.shape_cast %66 : vector<16xf32> to vector<16x1xf32>
    %cst_31 = arith.constant 0.00510204071 : f32
    %68 = vector.broadcast %cst_31 : f32 to vector<16x1xf32>
    %69 = arith.mulf %67, %68 : vector<16x1xf32>
    %cst_32 = arith.constant 9.99999974E-6 : f32
    %70 = vector.broadcast %cst_32 : f32 to vector<16x1xf32>
    %71 = arith.addf %69, %70 : vector<16x1xf32>
    %72 = math.rsqrt %71 : vector<16x1xf32>
    %73 = vector.broadcast %72 : vector<16x1xf32> to vector<16x256xf32>
    %74 = arith.mulf %64, %73 : vector<16x256xf32>
    %c0_33 = arith.constant 0 : index
    %c0_34 = arith.constant 0 : index
    %75 = vector.load %arg2[%c0_33, %c0_34] : memref<16x1xf32, #tpu.memory_space<vmem>>, vector<16x1xf32>
    %cst_35 = arith.constant 0.000000e+00 : f32
    %76 = vector.broadcast %cst_35 : f32 to vector<16x256xf32>
    %77 = arith.cmpf oge, %74, %76 : vector<16x256xf32>
    %78 = vector.broadcast %75 : vector<16x1xf32> to vector<16x256xf32>
    %79 = arith.mulf %78, %74 : vector<16x256xf32>
    %80 = arith.select %77, %74, %79 : vector<16x256xi1>, vector<16x256xf32>
    %c0_36 = arith.constant 0 : index
    %c0_37 = arith.constant 0 : index
    %81 = vector.load %arg3[%c0_36, %c0_37] : memref<16x256xf32, #tpu.memory_space<vmem>>, vector<16x256xf32>
    tpu.vector_store %arg3[%c0_36, %c0_37], %80 {strides = array<i32>} : memref<16x256xf32, #tpu.memory_space<vmem>>, vector<16x256xf32>,
    return
  }
}

</mosaic_0001>

<bundles_post_ra>
// kernel: fibonacci_kan_conv2d.1
= control target key start
LH: loop header
LB: loop body
LE: loop exit
PB: predicated region body
PF: predicated region fallthrough
CT: control target
= control target key end

     0   :  { %v1043_v37 = vmov -1.0   ;;  %s1666_s0 = inlined_call_operand.vmem [shape: f32[72,256], index: 0, kind: input, shape index: {}]   ;;  %s1667_s1 = inlined_call_operand.vmem [shape: f32[16,216], index: 1, kind: input, shape index: {}]   ;;  %s1668_s2 = inlined_call_operand.vmem [shape: f32[16,1], index: 2, kind: input, shape index: {}]   ;;  %s1669_s3 = inlined_call_operand.vmem [shape: f32[16,256], index: 3, kind: output, shape index: {}]  }
   0x1   :  { %v15_v0 = vld [vmem:[%s1666_s0 + $0x8] sm:$0xff]  ;;  %v17_v1 = vld [vmem:[%s1666_s0 + $0x18] sm:$0xff]  ;;  %v1074_v2 = vld [vmem:[%s1666_s0] sm:$0xff] }
   0x2   :  { %v33_v3 = vmul.f32 0.70710677, %v15_v0  ;;  %v35_v4 = vmul.f32 0.70710677, %v17_v1  ;;  %v1079_v5 = vld [vmem:[%s1666_s0 + $0x10] sm:$0xff]  ;;  %v1082_v9 = vmul.f32 0.5, %v15_v0  ;;  %931 = vtanh.f32 %v15_v0 }
   0x3   :  { %v32_v6 = vmul.f32 0.70710677, %v1074_v2  ;;  %v34_v10 = vmul.f32 0.70710677, %v1079_v5  ;;  %v1085_v15 = vmul.f32 0.5, %v17_v1  ;;  %v1088_v21 = vmul.f32 0.5, %v1074_v2 }
   0x4   :  { %v87_v7 = vand.u32 2147483647, %v33_v3  ;;  %v89_v8 = vand.u32 2147483647, %v35_v4  ;;  %933 = vtanh.f32 %v17_v1  ;;  %v1093_v25 = vld [vmem:[%s1666_s0 + $0x28] sm:$0xff]  ;;  %vm51_vm0 = vcmp.ge.f32.partialorder %v33_v3, 0.0 }
   0x5   :  { %v86_v16 = vand.u32 2147483647, %v32_v6  ;;  %v88_v17 = vand.u32 2147483647, %v34_v10  ;;  %vm53_vm1 = vcmp.ge.f32.partialorder %v35_v4, 0.0  ;;  %v1098_v27 = vld [vmem:[%s1666_s0 + $0x38] sm:$0xff] }
   0x6   :  { %v105_v11 = vmul.f32 0.3275911, %v87_v7  ;;  %v107_v12 = vmul.f32 0.3275911, %v89_v8  ;;  %v339_v13 = vsub.f32 0.0, %v87_v7  ;;  %v341_v14 = vsub.f32 0.0, %v89_v8 }
   0x7   :  { %v104_v23 = vmul.f32 0.3275911, %v86_v16  ;;  %v106_v24 = vmul.f32 0.3275911, %v88_v17  ;;  %v338_v26 = vsub.f32 0.0, %v86_v16  ;;  %v340_v30 = vsub.f32 0.0, %v88_v17 }
   0x8   :  { %v123_v18 = vadd.f32 1.0, %v105_v11  ;;  %v125_v19 = vadd.f32 1.0, %v107_v12  ;;  %v357_v20 = vmul.f32 %v339_v13, %v87_v7  ;;  %v359_v22 = vmul.f32 %v341_v14, %v89_v8  ;;  %v1116_v44 = vld [vmem:[%s1666_s0 + $0x20] sm:$0xff]  ;;  %v1124_v48 = vld [vmem:[%s1666_s0 + $0x30] sm:$0xff] }
   0x9   :  { %v122_v28 = vadd.f32 1.0, %v104_v23  ;;  %v124_v29 = vadd.f32 1.0, %v106_v24  ;;  %vm50_vm2 = vcmp.ge.f32.partialorder %v32_v6, 0.0  ;;  %v356_v32 = vmul.f32 %v338_v26, %v86_v16 }
   0xa   :  { %935 = vrcp.f32 %v123_v18  ;;  %v376_v31 = vmul.f32 1.442695, %v357_v20  ;;  %v37_v33 = vmul.f32 0.70710677, %v1093_v25  ;;  %v380_v34 = vmul.f32 1.442695, %v359_v22 }
   0xb   :  { %937 = vrcp.f32 %v125_v19  ;;  %vm52_vm3 = vcmp.ge.f32.partialorder %v34_v10, 0.0  ;;  %v358_v35 = vmul.f32 %v340_v30, %v88_v17  ;;  %v39_v36 = vmul.f32 0.70710677, %v1098_v27 }
   0xc   :  { %v1104_v38 = vsel %vm51_vm0, 1.0, %v1043_v37  ;;  %939 = vrcp.f32 %v122_v28  ;;  %v374_v39 = vmul.f32 1.442695, %v356_v32  ;;  %v91_v40 = vand.u32 2147483647, %v37_v33  ;;  %v1126_v49 = vpop.eup %931 }
   0xd   :  { %v1108_v41 = vsel %vm53_vm1, 1.0, %v1043_v37  ;;  %v1111_v42 = vsel %vm50_vm2, 1.0, %v1043_v37  ;;  %941 = vrcp.f32 %v124_v29  ;;  %v378_v43 = vmul.f32 1.442695, %v358_v35 }
   0xe   :  { %943 = vpow2.f32 %v376_v31  ;;  %v1119_v45 = vsel %vm52_vm3, 1.0, %v1043_v37  ;;  %v93_v46 = vand.u32 2147483647, %v39_v36  ;;  %v109_v47 = vmul.f32 0.3275911, %v91_v40  ;;  %v1134_v55 = vpop.eup %933 }
   0xf   :  { %945 = vpow2.f32 %v380_v34  ;;  %v1129_v50 = vmul.f32 0.5, %v1079_v5  ;;  %v343_v51 = vsub.f32 0.0, %v91_v40  ;;  %v1132_v52 = vmul.f32 0.5, %v1093_v25 }
  0x10   :  { %947 = vpow2.f32 %v374_v39  ;;  %vm55_vm4 = vcmp.ge.f32.partialorder %v37_v33, 0.0  ;;  %v111_v53 = vmul.f32 0.3275911, %v93_v46  ;;  %v127_v54 = vadd.f32 1.0, %v109_v47 }
  0x11   :  { %949 = vpow2.f32 %v378_v43  ;;  %vm57_vm5 = vcmp.ge.f32.partialorder %v39_v36, 0.0  ;;  %v36_v56 = vmul.f32 0.70710677, %v1116_v44  ;;  %v1138_v57 = vmul.f32 0.70710677, %v1124_v48 }
  0x12   :  { %v129_v59 = vadd.f32 1.0, %v111_v53  ;;  %951 = vrcp.f32 %v127_v54  ;;  %v345_v60 = vsub.f32 0.0, %v93_v46  ;;  %v361_v61 = vmul.f32 %v343_v51, %v91_v40 }
  0x13   :  { %953 = vtanh.f32 %v1074_v2  ;;  %v1148_v0 = vsel %vm55_vm4, 1.0, %v1043_v37  ;;  %vm54_vm6 = vcmp.ge.f32.partialorder %v36_v56, 0.0  ;;  %v1152_v3 = vsel %vm57_vm5, 1.0, %v1043_v37 }
  0x14   :  { %v1140_v58 = vpop.eup %935  ;;  %955 = vrcp.f32 %v129_v59  ;;  %v1155_v4 = vmul.f32 0.5, %v1098_v27  ;;  %v90_v7 = vand.u32 2147483647, %v36_v56  ;;  %v92_v2 = vand.u32 2147483647, %v1138_v57 }
  0x15   :  { %v1142_v62 = vpop.eup %937  ;;  %v177_v63 = vmul.f32 1.0614054, %v1140_v58  ;;  %957 = vtanh.f32 %v1079_v5  ;;  %v363_v11 = vmul.f32 %v345_v60, %v93_v46  ;;  %v384_v12 = vmul.f32 1.442695, %v361_v61 }
  0x16   :  { %v179_v1 = vmul.f32 1.0614054, %v1142_v62  ;;  %v1159_v8 = vpop.eup %939  ;;  %v1162_v13 = vsel %vm54_vm6, 1.0, %v1043_v37  ;;  %vm56_vm7 = vcmp.ge.f32.partialorder %v1138_v57, 0.0  ;;  %v108_v5 = vmul.f32 0.3275911, %v90_v7 }
  0x17   :  { %v195_v6 = vadd.f32 -1.4531521, %v177_v63  ;;  %v1164_v14 = vpop.eup %941  ;;  %v176_v17 = vmul.f32 1.0614054, %v1159_v8  ;;  %v110_v22 = vmul.f32 0.3275911, %v92_v2 }
  0x18   :  { %v197_v10 = vadd.f32 -1.4531521, %v179_v1  ;;  %v1169_v18 = vpop.eup %943  ;;  %v178_v20 = vmul.f32 1.0614054, %v1164_v14  ;;  %v342_v23 = vsub.f32 0.0, %v90_v7  ;;  %v126_v29 = vadd.f32 1.0, %v108_v5 }
  0x19   :  { %v213_v16 = vmul.f32 %v1140_v58, %v195_v6  ;;  %v1173_v24 = vpop.eup %945  ;;  %v194_v28 = vadd.f32 -1.4531521, %v176_v17  ;;  %v344_v30 = vsub.f32 0.0, %v92_v2  ;;  %v128_v34 = vadd.f32 1.0, %v110_v22 }
  0x1a   :  { %v215_v19 = vmul.f32 %v1142_v62, %v197_v10  ;;  %v1175_v31 = vpop.eup %947  ;;  %v196_v33 = vadd.f32 -1.4531521, %v178_v20  ;;  %v360_v35 = vmul.f32 %v342_v23, %v90_v7  ;;  %v388_v43 = vmul.f32 1.442695, %v363_v11 }
  0x1b   :  { %v231_v26 = vadd.f32 1.4214138, %v213_v16  ;;  %v1177_v36 = vpop.eup %949  ;;  %v212_v40 = vmul.f32 %v1159_v8, %v194_v28  ;;  %959 = vrcp.f32 %v126_v29  ;;  %v362_v53 = vmul.f32 %v344_v30, %v92_v2 }
  0x1c   :  { %v233_v32 = vadd.f32 1.4214138, %v215_v19  ;;  %v1181_v46 = vpop.eup %951  ;;  %v214_v51 = vmul.f32 %v1164_v14, %v196_v33  ;;  %961 = vrcp.f32 %v128_v34  ;;  %v382_v6 = vmul.f32 1.442695, %v360_v35  ;;  %v1215_v35 = vld [vmem:[%s1666_s0 + $0x58] sm:$0xff] }
  0x1d   :  { %v249_v39 = vmul.f32 %v1140_v58, %v231_v26  ;;  %v1185_v54 = vpop.eup %953  ;;  %v230_v59 = vadd.f32 1.4214138, %v212_v40  ;;  %v181_v60 = vmul.f32 1.0614054, %v1181_v46  ;;  %963 = vtanh.f32 %v1093_v25 }
  0x1e   :  { %v251_v47 = vmul.f32 %v1142_v62, %v233_v32  ;;  %v1189_v61 = vpop.eup %955  ;;  %v232_v1 = vadd.f32 1.4214138, %v214_v51  ;;  %965 = vpow2.f32 %v384_v12  ;;  %v386_v25 = vmul.f32 1.442695, %v362_v53  ;;  %v1201_v12 = vld [vmem:[%s1666_s0 + $0x48] sm:$0xff] }
  0x1f   :  { %v267_v56 = vadd.f32 -0.28449672, %v249_v39  ;;  %v1191_v7 = vpop.eup %957  ;;  %v248_v2 = vmul.f32 %v1159_v8, %v230_v59  ;;  %v183_v11 = vmul.f32 1.0614054, %v1189_v61  ;;  %v199_v16 = vadd.f32 -1.4531521, %v181_v60 }
  0x20   :  { %v269_v63 = vadd.f32 -0.28449672, %v251_v47  ;;  %v250_v5 = vmul.f32 %v1164_v14, %v232_v1  ;;  %967 = vpow2.f32 %v388_v43  ;;  %v1207_v29 = vsel %vm56_vm7, 1.0, %v1043_v37 }
  0x21   :  { %v285_v10 = vmul.f32 %v1140_v58, %v267_v56  ;;  %v266_v20 = vadd.f32 -0.28449672, %v248_v2  ;;  %v201_v22 = vadd.f32 -1.4531521, %v183_v11  ;;  %v217_v23 = vmul.f32 %v1181_v46, %v199_v16 }
  0x22   :  { %v287_v17 = vmul.f32 %v1142_v62, %v269_v63  ;;  %v268_v28 = vadd.f32 -0.28449672, %v250_v5  ;;  %969 = vpow2.f32 %v382_v6  ;;  %v1220_v57 = vmul.f32 0.70710677, %v1201_v12 }
  0x23   :  { %v303_v19 = vadd.f32 0.2548296, %v285_v10  ;;  %v284_v32 = vmul.f32 %v1159_v8, %v266_v20  ;;  %v219_v33 = vmul.f32 %v1189_v61, %v201_v22  ;;  %v235_v34 = vadd.f32 1.4214138, %v217_v23 }
  0x24   :  { %v305_v26 = vadd.f32 0.2548296, %v287_v17  ;;  %v286_v40 = vmul.f32 %v1164_v14, %v268_v28  ;;  %971 = vpow2.f32 %v386_v25  ;;  %v1231_v63 = vmul.f32 0.70710677, %v1215_v35 }
  0x25   :  { %v321_v30 = vmul.f32 %v1140_v58, %v303_v19  ;;  %v1222_v43 = vpop.eup %959  ;;  %v302_v47 = vadd.f32 0.2548296, %v284_v32  ;;  %v237_v51 = vadd.f32 1.4214138, %v219_v33  ;;  %v253_v53 = vmul.f32 %v1181_v46, %v235_v34 }
  0x26   :  { %v323_v39 = vmul.f32 %v1142_v62, %v305_v26  ;;  %v1226_v56 = vpop.eup %961  ;;  %v304_v60 = vadd.f32 0.2548296, %v286_v40  ;;  %v180_v62 = vmul.f32 1.0614054, %v1222_v43  ;;  %973 = vtanh.f32 %v1098_v27 }
  0x27   :  { %v411_v58 = vmul.f32 %v1169_v18, %v321_v30  ;;  %v1233_v1 = vpop.eup %963  ;;  %v320_v10 = vmul.f32 %v1159_v8, %v302_v47  ;;  %v255_v18 = vmul.f32 %v1189_v61, %v237_v51  ;;  %v271_v2 = vadd.f32 -0.28449672, %v253_v53 }
  0x28   :  { %v413_v59 = vmul.f32 %v1173_v24, %v323_v39  ;;  %v966_v11 = vpop.eup %965  ;;  %v322_v17 = vmul.f32 %v1164_v14, %v304_v60  ;;  %v182_v24 = vmul.f32 1.0614054, %v1226_v56  ;;  %v198_v5 = vadd.f32 -1.4531521, %v180_v62 }
  0x29   :  { %v429_v6 = vsub.f32 1.0, %v411_v58  ;;  %v410_v19 = vmul.f32 %v1175_v31, %v320_v10  ;;  %v273_v20 = vadd.f32 -0.28449672, %v255_v18  ;;  %v289_v22 = vmul.f32 %v1181_v46, %v271_v2 }
  0x2a   :  { %v431_v16 = vsub.f32 1.0, %v413_v59  ;;  %v968_v23 = vpop.eup %967  ;;  %v412_v26 = vmul.f32 %v1177_v36, %v322_v17  ;;  %v200_v28 = vadd.f32 -1.4531521, %v182_v24  ;;  %v216_v30 = vmul.f32 %v1222_v43, %v198_v5 }
  0x2b   :  { %v447_v25 = vmul.f32 %v429_v6, %v1104_v38  ;;  %v428_v14 = vsub.f32 1.0, %v410_v19  ;;  %v291_v33 = vmul.f32 %v1189_v61, %v273_v20  ;;  %v307_v34 = vadd.f32 0.2548296, %v289_v22 }
  0x2c   :  { %v449_v8 = vmul.f32 %v431_v16, %v1108_v41  ;;  %v970_v39 = vpop.eup %969  ;;  %v430_v40 = vsub.f32 1.0, %v412_v26  ;;  %v218_v31 = vmul.f32 %v1226_v56, %v200_v28  ;;  %v234_v58 = vadd.f32 1.4214138, %v216_v30 }
  0x2d   :  { %v483_v32 = vadd.f32 1.0, %v447_v25  ;;  %v446_v41 = vmul.f32 %v428_v14, %v1111_v42  ;;  %v309_v51 = vadd.f32 0.2548296, %v291_v33  ;;  %v325_v36 = vmul.f32 %v1181_v46, %v307_v34 }
  0x2e   :  { %v485_v38 = vadd.f32 1.0, %v449_v8  ;;  %v972_v53 = vpop.eup %971  ;;  %v448_v60 = vmul.f32 %v430_v40, %v1119_v45  ;;  %v236_v62 = vadd.f32 1.4214138, %v218_v31  ;;  %v252_v6 = vmul.f32 %v1222_v43, %v234_v58  ;;  %v1269_v58 = vld [vmem:[%s1666_s0 + $0x40] sm:$0xff] }
  0x2f   :  { %v501_v47 = vmul.f32 %v483_v32, %v1082_v9  ;;  %v482_v10 = vadd.f32 1.0, %v446_v41  ;;  %v327_v18 = vmul.f32 %v1189_v61, %v309_v51  ;;  %v415_v2 = vmul.f32 %v966_v11, %v325_v36 }
  0x30   :  { %v503_v59 = vmul.f32 %v485_v38, %v1085_v15  ;;  %v484_v16 = vadd.f32 1.0, %v448_v60  ;;  %v254_v42 = vmul.f32 %v1226_v56, %v236_v62  ;;  %v270_v17 = vadd.f32 -0.28449672, %v252_v6  ;;  %v1278_v51 = vpop.eup %973 }
  0x31   :  { %v500_v46 = vmul.f32 %v482_v10, %v1088_v21  ;;  %v417_v24 = vmul.f32 %v968_v23, %v327_v18  ;;  %v433_v15 = vsub.f32 1.0, %v415_v2  ;;  %v95_v45 = vand.u32 2147483647, %v1220_v57 }
  0x32   :  { %v847_v9 = vpack.c.bf16 %v503_v59, %v501_v47  ;;  %v502_v5 = vmul.f32 %v484_v16, %v1129_v50  ;;  %v272_v25 = vadd.f32 -0.28449672, %v254_v42  ;;  %v288_v61 = vmul.f32 %v1222_v43, %v270_v17 }
  0x33   :  { %v97_v27 = vand.u32 2147483647, %v1231_v63  ;;  %v435_v11 = vsub.f32 1.0, %v417_v24  ;;  %v451_v19 = vmul.f32 %v433_v15, %v1148_v0  ;;  %v113_v20 = vmul.f32 0.3275911, %v95_v45 }
  0x34   :  { %848 = vmatprep.subr.bf16.mxu0 %v847_v9  ;;  %899 = vmatprep.subr.bf16.mxu1 %v847_v9  ;;  %v347_v22 = vsub.f32 0.0, %v95_v45  ;;  %v849_v8 = vpack.c.bf16 %v502_v5, %v500_v46  ;;  %v290_v21 = vmul.f32 %v1226_v56, %v272_v25  ;;  %v306_v23 = vadd.f32 0.2548296, %v288_v61 }
  0x35   :  { %v115_v26 = vmul.f32 0.3275911, %v97_v27  ;;  %v453_v28 = vmul.f32 %v435_v11, %v1152_v3  ;;  %v487_v30 = vadd.f32 1.0, %v451_v19  ;;  %v131_v50 = vadd.f32 1.0, %v113_v20 }
  0x36   :  { %v349_v32 = vsub.f32 0.0, %v97_v27  ;;  %850 = vmatpush1.bf16.msra.mxu0 %v849_v8  ;;  %913 = vmatpush1.bf16.msra.mxu1 %v849_v8  ;;  %v308_v14 = vadd.f32 0.2548296, %v290_v21  ;;  %v324_v33 = vmul.f32 %v1222_v43, %v306_v23  ;;  %v365_v38 = vmul.f32 %v347_v22, %v95_v45  ;;  %v1276_v43 = vld [vmem:[%s1666_s0 + $0x50] sm:$0xff]  ;;  %v1311_v45 = vld [vmem:[%s1666_s0 + $0x68] sm:$0xff] }
  0x37   :  { %v133_v34 = vadd.f32 1.0, %v115_v26  ;;  %v489_v0 = vadd.f32 1.0, %v453_v28  ;;  %v505_v40 = vmul.f32 %v487_v30, %v1132_v52  ;;  %975 = vrcp.f32 %v131_v50 }
  0x38   :  { %v367_v31 = vmul.f32 %v349_v32, %v97_v27  ;;  %v326_v3 = vmul.f32 %v1226_v56, %v308_v14  ;;  %v414_v47 = vmul.f32 %v970_v39, %v324_v33  ;;  %v468_v41 = vmul.f32 0.5, %v1116_v44 }
  0x39   :  { %977 = vrcp.f32 %v133_v34  ;;  %v507_v52 = vmul.f32 %v489_v0, %v1155_v4  ;;  %vm59_vm8 = vcmp.ge.f32.partialorder %v1220_v57, 0.0  ;;  %vm61_vm9 = vcmp.ge.f32.partialorder %v1231_v63, 0.0 }
  0x3a   :  { %v392_v36 = vmul.f32 1.442695, %v365_v38  ;;  %v416_v59 = vmul.f32 %v972_v53, %v326_v3  ;;  %v432_v56 = vsub.f32 1.0, %v414_v47  ;;  %v396_v39 = vmul.f32 1.442695, %v367_v31 }
  0x3b   :  { %v40_v60 = vmul.f32 0.70710677, %v1269_v58  ;;  %v851_v62 = vpack.c.bf16 %v507_v52, %v505_v40  ;;  %v470_v6 = vmul.f32 0.5, %v1124_v48  ;;  %979 = vtanh.f32 %v1116_v44 }
  0x3c   :  { %v1287_v10 = vmul.f32 0.70710677, %v1276_v43  ;;  %v434_v18 = vsub.f32 1.0, %v416_v59  ;;  %v450_v4 = vmul.f32 %v432_v56, %v1162_v13  ;;  %981 = vtanh.f32 %v1124_v48 }
  0x3d   :  { %v1292_v57 = vsel %vm59_vm8, 1.0, %v1043_v37  ;;  %852 = vmatprep.subr.bf16.mxu0 %v851_v62  ;;  %900 = vmatprep.subr.bf16.mxu1 %v851_v62  ;;  %v1297_v53 = vsel %vm61_vm9, 1.0, %v1043_v37  ;;  %983 = vpow2.f32 %v392_v36  ;;  %v1300_v44 = vmul.f32 0.5, %v1201_v12  ;;  %v1363_v36 = vld [vmem:[%s1666_s0 + $0x70] sm:$0xff] }
  0x3e   :  { %v94_v2 = vand.u32 2147483647, %v40_v60  ;;  %v452_v9 = vmul.f32 %v434_v18, %v1207_v29  ;;  %v486_v13 = vadd.f32 1.0, %v450_v4  ;;  %985 = vpow2.f32 %v396_v39  ;;  %v1316_v29 = vld [vmem:[%s1666_s0 + $0x78] sm:$0xff] }
  0x3f   :  { %v96_v48 = vand.u32 2147483647, %v1287_v10  ;;  %v1305_v16 = vmul.f32 0.5, %v1215_v35  ;;  %987 = vtanh.f32 %v1201_v12  ;;  %vm58_vm10 = vcmp.ge.f32.partialorder %v40_v60, 0.0 }
  0x40   :  { %v112_v42 = vmul.f32 0.3275911, %v94_v2  ;;  %v346_v63 = vsub.f32 0.0, %v94_v2  ;;  %v488_v17 = vadd.f32 1.0, %v452_v9  ;;  %v504_v46 = vmul.f32 %v486_v13, %v468_v41 }
  0x41   :  { %v114_v24 = vmul.f32 0.3275911, %v96_v48  ;;  %v348_v15 = vsub.f32 0.0, %v96_v48  ;;  %v1318_v5 = vpop.eup %975  ;;  %989 = vtanh.f32 %v1215_v35  ;;  %v45_v8 = vmul.f32 0.70710677, %v1311_v45 }
  0x42   :  { %v130_v12 = vadd.f32 1.0, %v112_v42  ;;  %v364_v25 = vmul.f32 %v346_v63, %v94_v2  ;;  %v506_v27 = vmul.f32 %v488_v17, %v470_v6  ;;  %v185_v11 = vmul.f32 1.0614054, %v1318_v5 }
  0x43   :  { %v1321_v61 = vpop.eup %977  ;;  %v132_v19 = vadd.f32 1.0, %v114_v24  ;;  %v366_v20 = vmul.f32 %v348_v15, %v96_v48  ;;  %v47_v21 = vmul.f32 0.70710677, %v1316_v29  ;;  %v1328_v35 = vmul.f32 0.5, %v1269_v58 }
  0x44   :  { %v187_v22 = vmul.f32 1.0614054, %v1321_v61  ;;  %991 = vrcp.f32 %v130_v12  ;;  %v853_v23 = vpack.c.bf16 %v506_v27, %v504_v46  ;;  %v203_v26 = vadd.f32 -1.4531521, %v185_v11 }
  0x45   :  { %993 = vrcp.f32 %v132_v19  ;;  %v1330_v28 = vpop.eup %979  ;;  %vm60_vm11 = vcmp.ge.f32.partialorder %v1287_v10, 0.0  ;;  %v1335_v50 = vsel %vm58_vm10, 1.0, %v1043_v37  ;;  %v390_v32 = vmul.f32 1.442695, %v364_v25 }
  0x46   :  { %v205_v30 = vadd.f32 -1.4531521, %v187_v22  ;;  %v1337_v14 = vpop.eup %981  ;;  %854 = vmatpush1.bf16.msra.mxu0 %v853_v23  ;;  %914 = vmatpush1.bf16.msra.mxu1 %v853_v23  ;;  %v221_v33 = vmul.f32 %v1318_v5, %v203_v26  ;;  %v394_v34 = vmul.f32 1.442695, %v366_v20  ;;  %995 = vtanh.f32 %v1269_v58  ;;  %v1358_v58 = vld [vmem:[%s1666_s0 + $0x60] sm:$0xff] }
  0x47   :  { %vm63_vm12 = vcmp.ge.f32.partialorder %v45_v8, 0.0  ;;  %v1341_v38 = vpop.eup %983  ;;  %vm65_vm13 = vcmp.ge.f32.partialorder %v47_v21, 0.0  ;;  %v99_v40 = vand.u32 2147483647, %v45_v8  ;;  %v101_v31 = vand.u32 2147483647, %v47_v21 }
  0x48   :  { %v223_v0 = vmul.f32 %v1321_v61, %v205_v30  ;;  %v1344_v3 = vpop.eup %985  ;;  %v239_v47 = vadd.f32 1.4214138, %v221_v33  ;;  %v1349_v41 = vsel %vm60_vm11, 1.0, %v1043_v37  ;;  %v1352_v52 = vmul.f32 0.5, %v1276_v43 }
  0x49   :  { %997 = vtanh.f32 %v1276_v43  ;;  %v1365_v59 = vpop.eup %987  ;;  %v117_v39 = vmul.f32 0.3275911, %v99_v40  ;;  %v119_v60 = vmul.f32 0.3275911, %v101_v31  ;;  %v1370_v43 = vsel %vm63_vm12, 1.0, %v1043_v37 }
  0x4a   :  { %v241_v56 = vadd.f32 1.4214138, %v223_v0  ;;  %999 = vpow2.f32 %v390_v32  ;;  %v257_v62 = vmul.f32 %v1318_v5, %v239_v47  ;;  %v1374_v6 = vsel %vm65_vm13, 1.0, %v1043_v37 }
  0x4b   :  { %1001 = vpow2.f32 %v394_v34  ;;  %v1376_v10 = vpop.eup %989  ;;  %v135_v4 = vadd.f32 1.0, %v117_v39  ;;  %v137_v2 = vadd.f32 1.0, %v119_v60  ;;  %v1380_v9 = vmul.f32 0.70710677, %v1358_v58 }
  0x4c   :  { %v259_v18 = vmul.f32 %v1321_v61, %v241_v56  ;;  %v275_v13 = vadd.f32 -0.28449672, %v257_v62  ;;  %v351_v48 = vsub.f32 0.0, %v99_v40  ;;  %1003 = vtanh.f32 %v1311_v45 }
  0x4d   :  { %v1384_v42 = vmul.f32 0.70710677, %v1363_v36  ;;  %1005 = vrcp.f32 %v135_v4  ;;  %v353_v46 = vsub.f32 0.0, %v101_v31  ;;  %v1389_v24 = vmul.f32 0.5, %v1311_v45 }
  0x4e   :  { %v1386_v63 = vpop.eup %991  ;;  %v277_v17 = vadd.f32 -0.28449672, %v259_v18  ;;  %v293_v12 = vmul.f32 %v1318_v5, %v275_v13  ;;  %1007 = vrcp.f32 %v137_v2  ;;  %v1396_v27 = vmul.f32 0.5, %v1316_v29 }
  0x4f   :  { %v1391_v15 = vpop.eup %993  ;;  %v184_v25 = vmul.f32 1.0614054, %v1386_v63  ;;  %1009 = vtanh.f32 %v1316_v29  ;;  %v98_v20 = vand.u32 2147483647, %v1380_v9  ;;  %v369_v21 = vmul.f32 %v351_v48, %v99_v40 }
  0x50   :  { %v295_v11 = vmul.f32 %v1321_v61, %v277_v17  ;;  %v186_v19 = vmul.f32 1.0614054, %v1391_v15  ;;  %v1402_v45 = vpop.eup %995  ;;  %v311_v22 = vadd.f32 0.2548296, %v293_v12  ;;  %v100_v23 = vand.u32 2147483647, %v1384_v42 }
  0x51   :  { %v202_v8 = vadd.f32 -1.4531521, %v184_v25  ;;  %v371_v32 = vmul.f32 %v353_v46, %v101_v31  ;;  %v116_v33 = vmul.f32 0.3275911, %v98_v20  ;;  %v350_v56 = vsub.f32 0.0, %v98_v20 }
  0x52   :  { %v313_v26 = vadd.f32 0.2548296, %v295_v11  ;;  %v204_v30 = vadd.f32 -1.4531521, %v186_v19  ;;  %v329_v0 = vmul.f32 %v1318_v5, %v311_v22  ;;  %v118_v29 = vmul.f32 0.3275911, %v100_v23 }
  0x53   :  { %v1405_v34 = vpop.eup %997  ;;  %v220_v47 = vmul.f32 %v1386_v63, %v202_v8  ;;  %v134_v40 = vadd.f32 1.0, %v116_v33  ;;  %v352_v18 = vsub.f32 0.0, %v100_v23  ;;  %v368_v48 = vmul.f32 %v350_v56, %v98_v20 }
  0x54   :  { %v1000_v39 = vpop.eup %999  ;;  %v331_v60 = vmul.f32 %v1321_v61, %v313_v26  ;;  %v222_v62 = vmul.f32 %v1391_v15, %v204_v30  ;;  %v419_v2 = vmul.f32 %v1341_v38, %v329_v0  ;;  %v136_v13 = vadd.f32 1.0, %v118_v29 }
  0x55   :  { %v1002_v4 = vpop.eup %1001  ;;  %v238_v31 = vadd.f32 1.4214138, %v220_v47  ;;  %v400_v46 = vmul.f32 1.442695, %v369_v21  ;;  %1011 = vrcp.f32 %v134_v40  ;;  %v370_v11 = vmul.f32 %v352_v18, %v100_v23 }
  0x56   :  { %v421_v17 = vmul.f32 %v1344_v3, %v331_v60  ;;  %v240_v5 = vadd.f32 1.4214138, %v222_v62  ;;  %v1413_v12 = vpop.eup %1003  ;;  %v437_v25 = vsub.f32 1.0, %v419_v2  ;;  %1013 = vrcp.f32 %v136_v13 }
  0x57   :  { %v256_v61 = vmul.f32 %v1386_v63, %v238_v31  ;;  %v1416_v19 = vpop.eup %1005  ;;  %v404_v8 = vmul.f32 1.442695, %v371_v32  ;;  %vm62_vm14 = vcmp.ge.f32.partialorder %v1380_v9, 0.0  ;;  %v398_v30 = vmul.f32 1.442695, %v368_v48 }
  0x58   :  { %v439_v22 = vsub.f32 1.0, %v421_v17  ;;  %v258_v38 = vmul.f32 %v1391_v15, %v240_v5  ;;  %v1420_v20 = vpop.eup %1007  ;;  %v455_v3 = vmul.f32 %v437_v25, %v1292_v57  ;;  %v189_v26 = vmul.f32 1.0614054, %v1416_v19  ;;  %v1432_v57 = vld [vmem:[%s1666_s0 + $0x88] sm:$0xff] }
  0x59   :  { %v274_v21 = vadd.f32 -0.28449672, %v256_v61  ;;  %v1424_v33 = vpop.eup %1009  ;;  %v191_v47 = vmul.f32 1.0614054, %v1420_v20  ;;  %1015 = vpow2.f32 %v400_v46  ;;  %v402_v60 = vmul.f32 1.442695, %v370_v11 }
  0x5a   :  { %v457_v23 = vmul.f32 %v439_v22, %v1297_v53  ;;  %v276_v0 = vadd.f32 -0.28449672, %v258_v38  ;;  %v491_v29 = vadd.f32 1.0, %v455_v3  ;;  %v207_v56 = vadd.f32 -1.4531521, %v189_v26 }
  0x5b   :  { %v292_v32 = vmul.f32 %v1386_v63, %v274_v21  ;;  %v209_v18 = vadd.f32 -1.4531521, %v191_v47  ;;  %1017 = vpow2.f32 %v404_v8  ;;  %v1440_v5 = vmul.f32 0.70710677, %v1432_v57 }
  0x5c   :  { %v493_v62 = vadd.f32 1.0, %v457_v23  ;;  %v294_v40 = vmul.f32 %v1391_v15, %v276_v0  ;;  %v509_v53 = vmul.f32 %v491_v29, %v1300_v44  ;;  %v225_v31 = vmul.f32 %v1416_v19, %v207_v56 }
  0x5d   :  { %v310_v2 = vadd.f32 0.2548296, %v292_v32  ;;  %1019 = vpow2.f32 %v398_v30  ;;  %v227_v17 = vmul.f32 %v1420_v20, %v209_v18  ;;  %v1446_v61 = vsel %vm62_vm14, 1.0, %v1043_v37 }
  0x5e   :  { %v511_v13 = vmul.f32 %v493_v62, %v1305_v16  ;;  %v312_v48 = vadd.f32 0.2548296, %v294_v40  ;;  %v243_v25 = vadd.f32 1.4214138, %v225_v31  ;;  %1021 = vpow2.f32 %v402_v60 }
  0x5f   :  { %v328_v46 = vmul.f32 %v1386_v63, %v310_v2  ;;  %v1448_v44 = vpop.eup %1011  ;;  %v245_v22 = vadd.f32 1.4214138, %v227_v17  ;;  %1023 = vtanh.f32 %v1358_v58  ;;  %vm64_vm15 = vcmp.ge.f32.partialorder %v1384_v42, 0.0 }
  0x60   :  { %v855_v11 = vpack.c.bf16 %v511_v13, %v509_v53  ;;  %v330_v16 = vmul.f32 %v1391_v15, %v312_v48  ;;  %v1452_v38 = vpop.eup %1013  ;;  %v261_v63 = vmul.f32 %v1416_v19, %v243_v25  ;;  %v188_v9 = vmul.f32 1.0614054, %v1448_v44  ;;  %v1471_v48 = vld [vmem:[%s1666_s0 + $0x80] sm:$0xff] }
  0x61   :  { %v418_v8 = vmul.f32 %v1000_v39, %v328_v46  ;;  %1025 = vtanh.f32 %v1363_v36  ;;  %v263_v21 = vmul.f32 %v1420_v20, %v245_v22  ;;  %v190_v15 = vmul.f32 1.0614054, %v1452_v38 }
  0x62   :  { %856 = vmatprep.subr.bf16.mxu0 %v855_v11  ;;  %v420_v3 = vmul.f32 %v1002_v4, %v330_v16  ;;  %901 = vmatprep.subr.bf16.mxu1 %v855_v11  ;;  %v103_v26 = vand.u32 2147483647, %v1440_v5  ;;  %v279_v23 = vadd.f32 -0.28449672, %v261_v63  ;;  %v206_v39 = vadd.f32 -1.4531521, %v188_v9 }
  0x63   :  { %v436_v30 = vsub.f32 1.0, %v418_v8  ;;  %1027 = vtanh.f32 %v1432_v57  ;;  %v1016_v0 = vpop.eup %1015  ;;  %v281_v29 = vadd.f32 -0.28449672, %v263_v21  ;;  %v208_v32 = vadd.f32 -1.4531521, %v190_v15 }
  0x64   :  { %v438_v47 = vsub.f32 1.0, %v420_v3  ;;  %v355_v56 = vsub.f32 0.0, %v103_v26  ;;  %v297_v4 = vmul.f32 %v1416_v19, %v279_v23  ;;  %v224_v62 = vmul.f32 %v1448_v44, %v206_v39 }
  0x65   :  { %v454_v60 = vmul.f32 %v436_v30, %v1335_v50  ;;  %v121_v40 = vmul.f32 0.3275911, %v103_v26  ;;  %v1018_v18 = vpop.eup %1017  ;;  %v299_v2 = vmul.f32 %v1420_v20, %v281_v29  ;;  %v226_v31 = vmul.f32 %v1452_v38, %v208_v32 }
  0x66   :  { %v456_v53 = vmul.f32 %v438_v47, %v1349_v41  ;;  %v373_v13 = vmul.f32 %v355_v56, %v103_v26  ;;  %v315_v46 = vadd.f32 0.2548296, %v297_v4  ;;  %v242_v25 = vadd.f32 1.4214138, %v224_v62 }
  0x67   :  { %v1020_v17 = vpop.eup %1019  ;;  %v490_v50 = vadd.f32 1.0, %v454_v60  ;;  %v139_v11 = vadd.f32 1.0, %v121_v40  ;;  %v317_v22 = vadd.f32 0.2548296, %v299_v2  ;;  %v244_v8 = vadd.f32 1.4214138, %v226_v31 }
  0x68   :  { %v492_v16 = vadd.f32 1.0, %v456_v53  ;;  %1029 = vtanh.f32 %v1471_v48  ;;  %v1022_v41 = vpop.eup %1021  ;;  %v333_v9 = vmul.f32 %v1416_v19, %v315_v46  ;;  %v260_v3 = vmul.f32 %v1448_v44, %v242_v25 }
  0x69   :  { %v508_v63 = vmul.f32 %v490_v50, %v1328_v35  ;;  %1031 = vrcp.f32 %v139_v11  ;;  %v1477_v21 = vpop.eup %1023  ;;  %v335_v26 = vmul.f32 %v1420_v20, %v317_v22  ;;  %v262_v30 = vmul.f32 %v1452_v38, %v244_v8 }
  0x6a   :  { %v510_v15 = vmul.f32 %v492_v16, %v1352_v52  ;;  %v408_v23 = vmul.f32 1.442695, %v373_v13  ;;  %v423_v47 = vmul.f32 %v1016_v0, %v333_v9  ;;  %v278_v29 = vadd.f32 -0.28449672, %v260_v3 }
  0x6b   :  { %v1482_v39 = vpop.eup %1025  ;;  %v1485_v35 = vmul.f32 0.70710677, %v1471_v48  ;;  %v1489_v19 = vpack.c.bf16 %v1233_v1, %v1134_v55  ;;  %v425_v56 = vmul.f32 %v1018_v18, %v335_v26  ;;  %v82_v52 = vsel %vm64_vm15, 1.0, %v1043_v37 }
  0x6c   :  { %v857_v32 = vpack.c.bf16 %v510_v15, %v508_v63  ;;  %v280_v20 = vadd.f32 -0.28449672, %v262_v30  ;;  %v441_v4 = vsub.f32 1.0, %v423_v47  ;;  %v296_v0 = vmul.f32 %v1448_v44, %v278_v29 }
  0x6d   :  { %v1494_v60 = vpop.eup %1027  ;;  %v476_v62 = vmul.f32 0.5, %v1358_v58  ;;  %v102_v40 = vand.u32 2147483647, %v1485_v35  ;;  %v443_v53 = vsub.f32 1.0, %v425_v56  ;;  %1033 = vpow2.f32 %v408_v23 }
  0x6e   :  { %858 = vmatpush1.bf16.msra.mxu0 %v857_v32  ;;  %915 = vmatpush1.bf16.msra.mxu1 %v857_v32  ;;  %v298_v2 = vmul.f32 %v1452_v38, %v280_v20  ;;  %v1502_v42 = vpack.c.bf16 %v1330_v28, %v1191_v7  ;;  %v459_v18 = vmul.f32 %v441_v4, %v1370_v43  ;;  %v314_v31 = vadd.f32 0.2548296, %v296_v0 }
  0x6f   :  { %v120_v13 = vmul.f32 0.3275911, %v102_v40  ;;  %v354_v50 = vsub.f32 0.0, %v102_v40  ;;  %v461_v46 = vmul.f32 %v443_v53, %v1374_v6  ;;  %v1508_v25 = vpack.c.bf16 %v1365_v59, %v1278_v51 }
  0x70   :  { %v316_v58 = vadd.f32 0.2548296, %v298_v2  ;;  %v1512_v11 = vpack.c.bf16 %v1402_v45, %v1337_v14  ;;  %v495_v16 = vadd.f32 1.0, %v459_v18  ;;  %v332_v22 = vmul.f32 %v1448_v44, %v314_v31 }
  0x71   :  { %v138_v8 = vadd.f32 1.0, %v120_v13  ;;  %v372_v63 = vmul.f32 %v354_v50, %v102_v40  ;;  %v497_v9 = vadd.f32 1.0, %v461_v46  ;;  %v1520_v6 = vpack.c.bf16 %v1413_v12, %v1376_v10 }
  0x72   :  { %v1515_v43 = vpop.eup %1029  ;;  %v334_v3 = vmul.f32 %v1452_v38, %v316_v58  ;;  %v1524_v15 = vpack.c.bf16 %v1477_v21, %v1405_v34  ;;  %v513_v30 = vmul.f32 %v495_v16, %v1389_v24  ;;  %v422_v44 = vmul.f32 %v1020_v17, %v332_v22 }
  0x73   :  { %v1526_v26 = vpop.eup %1031  ;;  %v478_v23 = vmul.f32 0.5, %v1363_v36  ;;  %1035 = vrcp.f32 %v138_v8  ;;  %v515_v47 = vmul.f32 %v497_v9, %v1396_v27  ;;  %v1534_v32 = vpack.c.bf16 %v1494_v60, %v1424_v33 }
  0x74   :  { %v424_v29 = vmul.f32 %v1022_v41, %v334_v3  ;;  %v193_v38 = vmul.f32 1.0614054, %v1526_v26  ;;  %v440_v56 = vsub.f32 1.0, %v422_v44  ;;  %v406_v20 = vmul.f32 1.442695, %v372_v63 }
  0x75   :  { %v1538_v4 = vpack.c.bf16 %v1515_v43, %v1482_v39  ;;  %v573_v24 = vmul.f32 %v1126_v49, %v1126_v49  ;;  %v859_v36 = vpack.c.bf16 %v515_v47, %v513_v30  ;;  %v575_v27 = vmul.f32 %v1134_v55, %v1134_v55 }
  0x76   :  { %v442_v17 = vsub.f32 1.0, %v424_v29  ;;  %v211_v0 = vadd.f32 -1.4531521, %v193_v38  ;;  %v458_v41 = vmul.f32 %v440_v56, %v1446_v61  ;;  %v572_v53 = vmul.f32 %v1185_v54, %v1185_v54 }
  0x77   :  { %v591_v40 = vadd.f32 1.0, %v573_v24  ;;  %v574_v2 = vmul.f32 %v1191_v7, %v1191_v7  ;;  %v1549_v18 = vpop.eup %1033  ;;  %860 = vmatprep.subr.bf16.mxu0 %v859_v36  ;;  %902 = vmatprep.subr.bf16.mxu1 %v859_v36  ;;  %v593_v50 = vadd.f32 1.0, %v575_v27  ;;  %v577_v55 = vmul.f32 %v1233_v1, %v1233_v1 }
  0x78   :  { %v460_v31 = vmul.f32 %v442_v17, %v82_v52  ;;  %v229_v13 = vmul.f32 %v1526_v26, %v211_v0  ;;  %v494_v46 = vadd.f32 1.0, %v458_v41  ;;  %v590_v61 = vadd.f32 1.0, %v572_v53 }
  0x79   :  { %v592_v58 = vadd.f32 1.0, %v574_v2  ;;  %v579_v16 = vmul.f32 %v1278_v51, %v1278_v51  ;;  %v1556_v7 = vpack.c.bf16 %v593_v50, %v591_v40  ;;  %v595_v63 = vadd.f32 1.0, %v577_v55 }
  0x7a   :  { %v496_v22 = vadd.f32 1.0, %v460_v31  ;;  %v247_v8 = vadd.f32 1.4214138, %v229_v13  ;;  %v512_v9 = vmul.f32 %v494_v46, %v476_v62  ;;  %v576_v30 = vmul.f32 %v1330_v28, %v1330_v28 }
  0x7b   :  { %v1558_v52 = vpack.c.bf16 %v592_v58, %v590_v61  ;;  %v597_v3 = vadd.f32 1.0, %v579_v16  ;;  %v578_v47 = vmul.f32 %v1337_v14, %v1337_v14  ;;  %v581_v51 = vmul.f32 %v1365_v59, %v1365_v59  ;;  %v627_v16 = vld [vmem:[%s1667_s1 + $0x8] sm:$0xff] }
  0x7c   :  { %v514_v44 = vmul.f32 %v496_v22, %v478_v23  ;;  %v265_v1 = vmul.f32 %v1526_v26, %v247_v8  ;;  %v594_v56 = vadd.f32 1.0, %v576_v30  ;;  %v583_v62 = vmul.f32 %v1376_v10, %v1376_v10 }
  0x7d   :  { %v1036_v29 = vpop.eup %1035  ;;  %v1567_v38 = vpack.c.bf16 %v597_v3, %v595_v63  ;;  %v580_v24 = vmul.f32 %v1402_v45, %v1402_v45  ;;  %v596_v17 = vadd.f32 1.0, %v578_v47  ;;  %v599_v0 = vadd.f32 1.0, %v581_v51 }
  0x7e   :  { %v861_v28 = vpack.c.bf16 %v514_v44, %v512_v9  ;;  %v283_v23 = vadd.f32 -0.28449672, %v265_v1  ;;  %v192_v36 = vmul.f32 1.0614054, %v1036_v29  ;;  %v601_v27 = vadd.f32 1.0, %v583_v62 }
  0x7f   :  { %v582_v14 = vmul.f32 %v1405_v34, %v1405_v34  ;;  %v598_v59 = vadd.f32 1.0, %v580_v24  ;;  %v1576_v53 = vpack.c.bf16 %v596_v17, %v594_v56  ;;  %v585_v10 = vmul.f32 %v1413_v12, %v1413_v12 }
  0x80   :  { %862 = vmatpush1.bf16.msra.mxu0 %v861_v28  ;;  %916 = vmatpush1.bf16.msra.mxu1 %v861_v28  ;;  %v301_v41 = vmul.f32 %v1526_v26, %v283_v23  ;;  %v210_v40 = vadd.f32 -1.4531521, %v192_v36  ;;  %v1580_v45 = vpack.c.bf16 %v601_v27, %v599_v0  ;;  %v587_v31 = vmul.f32 %v1424_v33, %v1424_v33  ;;  %v629_v33 = vld [vmem:[%s1667_s1 + $0x18] sm:$0xff] }
  0x81   :  { %v600_v2 = vadd.f32 1.0, %v582_v14  ;;  %v584_v34 = vmul.f32 %v1477_v21, %v1477_v21  ;;  %v603_v55 = vadd.f32 1.0, %v585_v10  ;;  %v586_v46 = vmul.f32 %v1482_v39, %v1482_v39 }
  0x82   :  { %v319_v13 = vadd.f32 0.2548296, %v301_v41  ;;  %v228_v50 = vmul.f32 %v1036_v29, %v210_v40  ;;  %1037 = vpow2.f32 %v406_v20  ;;  %v605_v58 = vadd.f32 1.0, %v587_v31 }
  0x83   :  { %v1588_v61 = vpack.c.bf16 %v600_v2, %v598_v59  ;;  %v602_v12 = vadd.f32 1.0, %v584_v34  ;;  %vm67_vm0 = vcmp.ge.f32.partialorder %v1440_v5, 0.0  ;;  %v604_v8 = vadd.f32 1.0, %v586_v46 }
  0x84   :  { %v337_v21 = vmul.f32 %v1526_v26, %v319_v13  ;;  %v246_v22 = vadd.f32 1.4214138, %v228_v50  ;;  %v895_v39 = vpack.c.bf16 %v605_v58, %v603_v55  ;;  %vm684_vm1 = vcmask 719872  }
  0x85   :  { %v897_v9 = vpack.c.bf16 %v604_v8, %v602_v12  ;;  %845 = vmatprep.mubr.msk.f32.mxu0 %vm684_vm1, %v627_v16  ;;  %846 = vmatprep.mubr.msk.f32.mxu1 %vm684_vm1, %v629_v33  ;;  %v85_v3 = vsel %vm67_vm0, 1.0, %v1043_v37  ;;  %v481_v47 = vmul.f32 0.5, %v1432_v57  ;;  %vm66_vm2 = vcmp.ge.f32.partialorder %v1485_v35, 0.0  ;;  %v626_v35 = vld [vmem:[%s1667_s1] sm:$0xff]  ;;  %v814_v16 = vld [vmem:[%s1668_s2 + $0x8] sm:$0xff] }
  0x86   :  { %v427_v20 = vmul.f32 %v1549_v18, %v337_v21  ;;  %v264_v63 = vmul.f32 %v1036_v29, %v246_v22  ;;  %v84_v23 = vsel %vm66_vm2, 1.0, %v1043_v37  ;;  %v480_v0 = vmul.f32 0.5, %v1471_v48 }
  0x87   :  { %v589_v37 = vmul.f32 %v1494_v60, %v1494_v60  ;;  %v768_v60 = vlaneseq }
  0x88   :  { %v445_v30 = vsub.f32 1.0, %v427_v20  ;;  %v282_v44 = vadd.f32 -0.28449672, %v264_v63 }
  0x8a   :  { %v463_v1 = vmul.f32 %v445_v30, %v85_v3  ;;  %v300_v5 = vmul.f32 %v1036_v29, %v282_v44 }
  0x8c   :  { %v499_v51 = vadd.f32 1.0, %v463_v1  ;;  %v318_v26 = vadd.f32 0.2548296, %v300_v5  ;;  %v1038_v56 = vpop.eup %1037 }
  0x8e   :  { %v517_v62 = vmul.f32 %v499_v51, %v481_v47  ;;  %v336_v24 = vmul.f32 %v1036_v29, %v318_v26  ;;  %v1044_v29 = vmov 0  }
  0x8f   :  { %929 = vset.pattern.permute.xlu0 %v1044_v29  ;;  %930 = vset.pattern.permute.xlu1 %v1044_v29 }
  0x90   :  { %v863_v18 = vpack.c.bf16 %v1126_v49, %v517_v62  ;;  %v426_v28 = vmul.f32 %v1038_v56, %v336_v24  ;;  %v588_v49 = vmul.f32 %v1515_v43, %v1515_v43 }
  0x92   :  { %864 = vmatprep.subr.bf16.mxu0 %v863_v18  ;;  %v444_v36 = vsub.f32 1.0, %v426_v28  ;;  %903 = vmatprep.subr.bf16.mxu1 %v863_v18  ;;  %v606_v48 = vadd.f32 1.0, %v588_v49 }
  0x94   :  { %v462_v17 = vmul.f32 %v444_v36, %v84_v23 }
  0x96   :  { %v498_v57 = vadd.f32 1.0, %v462_v17 }
  0x98   :  { %v516_v27 = vmul.f32 %v498_v57, %v480_v0 }
  0x9a   :  { %v865_v14 = vpack.c.bf16 %v1185_v54, %v516_v27  ;;  %v607_v54 = vadd.f32 1.0, %v589_v37 }
  0x9c   :  { %866 = vmatpush1.bf16.msra.mxu0 %v865_v14  ;;  %917 = vmatpush1.bf16.msra.mxu1 %v865_v14 }
  0x9d   :  { %868 = vmatprep.subr.bf16.mxu0 %v1489_v19  ;;  %904 = vmatprep.subr.bf16.mxu1 %v1489_v19  ;;  %v628_v19 = vld [vmem:[%s1667_s1 + $0x10] sm:$0xff] }
  0xa0   :  { %870 = vmatpush1.bf16.msra.mxu0 %v1502_v42  ;;  %918 = vmatpush1.bf16.msra.mxu1 %v1502_v42  ;;  %v769_v42 = vand.u32 127, %v768_v60 }
  0xa1   :  { %872 = vmatprep.subr.bf16.mxu0 %v1508_v25  ;;  %905 = vmatprep.subr.bf16.mxu1 %v1508_v25 }
  0xa2   :  { %v770_v25 = vadd.s32 128, %v769_v42 }
  0xa4   :  { %874 = vmatpush1.bf16.msra.mxu0 %v1512_v11  ;;  %919 = vmatpush1.bf16.msra.mxu1 %v1512_v11  ;;  %vm772_vm3 = vcmp.lt.s32.totalorder %v770_v25, 196 }
  0xa5   :  { %876 = vmatprep.subr.bf16.mxu0 %v1520_v6  ;;  %906 = vmatprep.subr.bf16.mxu1 %v1520_v6 }
  0xa8   :  { %878 = vmatpush1.bf16.msra.mxu0 %v1524_v15  ;;  %920 = vmatpush1.bf16.msra.mxu1 %v1524_v15 }
  0xa9   :  { %880 = vmatprep.subr.bf16.mxu0 %v1534_v32  ;;  %907 = vmatprep.subr.bf16.mxu1 %v1534_v32 }
  0xac   :  { %882 = vmatpush1.bf16.msra.mxu0 %v1538_v4  ;;  %921 = vmatpush1.bf16.msra.mxu1 %v1538_v4 }
  0xad   :  { %884 = vmatprep.subr.bf16.mxu0 %v1556_v7  ;;  %908 = vmatprep.subr.bf16.mxu1 %v1556_v7 }
  0xb0   :  { %886 = vmatpush1.bf16.msra.mxu0 %v1558_v52  ;;  %922 = vmatpush1.bf16.msra.mxu1 %v1558_v52 }
  0xb1   :  { %888 = vmatprep.subr.bf16.mxu0 %v1567_v38  ;;  %909 = vmatprep.subr.bf16.mxu1 %v1567_v38  ;;  %v813_v38 = vld [vmem:[%s1668_s2] sm:$0xff] }
  0xb4   :  { %890 = vmatpush1.bf16.msra.mxu0 %v1576_v53  ;;  %923 = vmatpush1.bf16.msra.mxu1 %v1576_v53 }
  0xb5   :  { %892 = vmatprep.subr.bf16.mxu0 %v1580_v45  ;;  %910 = vmatprep.subr.bf16.mxu1 %v1580_v45 }
  0xb8   :  { %894 = vmatpush1.bf16.msra.mxu0 %v1588_v61  ;;  %924 = vmatpush1.bf16.msra.mxu1 %v1588_v61 }
  0xb9   :  { %896 = vmatprep.subr.bf16.mxu0 %v895_v39  ;;  %911 = vmatprep.subr.bf16.mxu1 %v895_v39 }
  0xbc   :  { %898 = vmatpush1.bf16.msra.mxu0 %v897_v9  ;;  %925 = vmatpush1.bf16.msra.mxu1 %v897_v9 }
  0xbd   :  { %743 = vmatprep.subr.mxu0 %v607_v54  ;;  %912 = vmatprep.subr.mxu1 %v607_v54 }
  0xc0   :  { %744 = vmatpush1.msra.mxu0 %v606_v48  ;;  %926 = vmatpush1.msra.mxu1 %v606_v48 }
  0xc1   :  { %756 = vmatmul.mubr.f32.vlgmr.msra.gmra.mrb[0].mxu0 %v626_v35  ;;  %762 = vmatmul.mubr.f32.vlgmr.msra.gmra.mrb[0].mxu1 %v628_v19 }
 0x194   :  { %v757_v11 = vpop.f32.mrb[0].mxu0  ;;  %v763_v43 = vpop.f32.mrb[0].mxu1 }
 0x195   :  { %v759_v6 = vpop.f32.mrb[1].mxu0  ;;  %v765_v15 = vpop.f32.mrb[1].mxu1 }
 0x196   :  { %v774_v32 = vsel %vm772_vm3, %v759_v6, 0.0  ;;  %v776_v4 = vsel %vm772_vm3, %v765_v15, 0.0 }
 0x197   :  { %v777_v7 = vadd.f32 %v774_v32, %v757_v11  ;;  %v780_v52 = vadd.f32 %v776_v4, %v763_v43 }
 0x199   :  { %778 = vadd.xlane.f32.xlu0 %v777_v7 }
 0x19d   :  { %781 = vadd.xlane.f32.xlu0 %v780_v52 }
 0x1b3   :  { %821 = vperm.xlu0 %929, %v813_v38  }
 0x226   :  { %v779_v59 = vpop.xlane.xlu0 %778 }
 0x227   :  { %v783_v41 = vmul.f32 0.0051020407, %v779_v59 }
 0x229   :  { %v785_v40 = vsub.f32 %v757_v11, %v783_v41  ;;  %v786_v53 = vsub.f32 %v759_v6, %v783_v41 }
 0x22a   :  { %v782_v10 = vpop.xlane.xlu0 %781 }
 0x22b   :  { %v784_v45 = vmul.f32 0.0051020407, %v782_v10  ;;  %v790_v2 = vsel %vm772_vm3, %v786_v53, 0.0  ;;  %v793_v31 = vmul.f32 %v785_v40, %v785_v40 }
 0x22c   :  { %v794_v34 = vmul.f32 %v790_v2, %v790_v2 }
 0x22d   :  { %v787_v13 = vsub.f32 %v763_v43, %v784_v45  ;;  %v788_v50 = vsub.f32 %v765_v15, %v784_v45 }
 0x22e   :  { %v797_v55 = vadd.f32 %v794_v34, %v793_v31 }
 0x22f   :  { %v792_v46 = vsel %vm772_vm3, %v788_v50, 0.0  ;;  %v795_v61 = vmul.f32 %v787_v13, %v787_v13 }
 0x230   :  { %798 = vadd.xlane.f32.xlu1 %v797_v55  ;;  %v796_v58 = vmul.f32 %v792_v46, %v792_v46 }
 0x232   :  { %v800_v12 = vadd.f32 %v796_v58, %v795_v61  ;;  %v822_v9 = vpop.permute.xlu0 %821 }
 0x234   :  { %801 = vadd.xlane.f32.xlu1 %v800_v12 }
 0x245   :  { %826 = vperm.xlu1 %930, %v814_v16  }
 0x2bd   :  { %v799_v33 = vpop.xlane.xlu1 %798 }
 0x2be   :  { %v803_v21 = vmul.f32 0.0051020407, %v799_v33 }
 0x2c0   :  { %v805_v22 = vadd.f32 1e-05, %v803_v21 }
 0x2c1   :  { %v802_v8 = vpop.xlane.xlu1 %801 }
 0x2c2   :  { %1039 = vrsqrt.f32 %v805_v22  ;;  %v804_v39 = vmul.f32 0.0051020407, %v802_v8 }
 0x2c4   :  { %v806_v20 = vadd.f32 1e-05, %v804_v39 }
 0x2c5   :  { %v827_v5 = vpop.permute.xlu1 %826 }
 0x2c6   :  { %1041 = vrsqrt.f32 %v806_v20 }
 0x2cc   :  { %v1040_v63 = vpop.eup %1039 }
 0x2cd   :  { %v809_v3 = vmul.f32 %v1040_v63, %v785_v40  ;;  %v810_v30 = vmul.f32 %v1040_v63, %v790_v2 }
 0x2cf   :  { %vm815_vm4 = vcmp.ge.f32.partialorder %v809_v3, 0.0  ;;  %vm816_vm5 = vcmp.ge.f32.partialorder %v810_v30, 0.0  ;;  %v829_v44 = vmul.f32 %v822_v9, %v809_v3  ;;  %v830_v1 = vmul.f32 %v822_v9, %v810_v30 }
 0x2d0   :  { %v1042_v47 = vpop.eup %1041 }
 0x2d1   :  { %v833_v51 = vsel %vm815_vm4, %v809_v3, %v829_v44  ;;  %v834_v26 = vsel %vm816_vm5, %v810_v30, %v830_v1  ;;  %v811_v56 = vmul.f32 %v1042_v47, %v787_v13  ;;  %v812_v62 = vmul.f32 %v1042_v47, %v792_v46 }
 0x2d2   :  { %837 = vst [vmem:[%s1669_s3] sm:$0xff] %v833_v51  ;;  %838 = vst [vmem:[%s1669_s3 + $0x8] sm:$0xff] %v834_v26 }
 0x2d3   :  { %vm817_vm6 = vcmp.ge.f32.partialorder %v811_v56, 0.0  ;;  %vm818_vm7 = vcmp.ge.f32.partialorder %v812_v62, 0.0  ;;  %v831_v24 = vmul.f32 %v827_v5, %v811_v56  ;;  %v832_v18 = vmul.f32 %v827_v5, %v812_v62 }
 0x2d5   :  { %v835_v28 = vsel %vm817_vm6, %v811_v56, %v831_v24  ;;  %v836_v23 = vsel %vm818_vm7, %v812_v62, %v832_v18 }
 0x2d6   :  { %839 = vst [vmem:[%s1669_s3 + $0x10] sm:$0xff] %v835_v28  ;;  %840 = vst [vmem:[%s1669_s3 + $0x18] sm:$0xff] %v836_v23 }

</bundles_post_ra>
